<compile_context>
chip_gen: v6e
topology: v6e:2x2x1
jax: 0.10.0
libtpu: 0.0.40
codegen_flags: <defaults>
</compile_context>

<pallas_src>
import functools

import numpy as np
import jax
import jax.numpy as jnp
from jax.experimental import pallas as pl
from jax.experimental.pallas import tpu as pltpu


def _nearest_src_indices(out_len: int, in_len: int) -> np.ndarray:
    """torch.nn.Upsample(mode='nearest'): src = min(floor(i * in/out), in-1)."""
    scale = np.float32(in_len) / np.float32(out_len)
    idx = np.floor(np.arange(out_len, dtype=np.float32) * scale).astype(np.int64)
    return np.minimum(idx, in_len - 1)


def _build_upsample_masks(L: int, K: int):
    """One-hot masks turning 'nearest-upsample of the pooled sequence' into a
    sum over a handful of statically right-shifted copies of the stride-1 pool."""
    Ls1 = L - K + 1            # stride-1 pooled length
    Ls9 = (L - K) // K + 1     # stride-K pooled length
    i = np.arange(L)
    src1 = _nearest_src_indices(L, Ls1)        # index into the stride-1 pool
    src9 = _nearest_src_indices(L, Ls9) * K    # stride-K pool sample j == stride-1 sample K*j
    d1 = i - src1                              # right-shift needed at each output position
    d9 = i - src9
    shifts = tuple(sorted(set(d1.tolist()) | set(d9.tolist())))
    m1 = np.zeros((len(shifts), L), np.float32)
    m9 = np.zeros((len(shifts), L), np.float32)
    for t, d in enumerate(shifts):
        m1[t, d1 == d] = 1.0
        m9[t, d9 == d] = 1.0
    return shifts, m1, m9


def _multiscale_kernel(x_ref, m1_ref, m9_ref, o_ref, *, K, shifts):
    x = x_ref[0].astype(jnp.float32)                 # (tc, L)
    L = x.shape[-1]

    # --- k=K sliding sum / max at stride 1, evaluated at every position. ---
    # Positions >= L-K+1 hold wrapped-around garbage; the one-hot upsample
    # masks below never select them (and 0 * finite == 0 exactly).
    xx = jnp.concatenate([x, x], axis=1)             # (tc, 2L)
    s = x
    m = x
    for k in range(1, K):
        xk = xx[:, k:k + L]                          # xk[:, i] = x[:, (i + k) % L]
        s = s + xk
        m = jnp.maximum(m, xk)
    p_avg = s * (1.0 / K)
    p_max = m

    # --- nearest upsample == exact one-hot select over static right-shifts. ---
    pa2 = jnp.concatenate([p_avg, p_avg], axis=1)    # (tc, 2L)
    pm2 = jnp.concatenate([p_max, p_max], axis=1)
    out_a1 = jnp.zeros_like(x)
    out_a9 = jnp.zeros_like(x)
    out_m1 = jnp.zeros_like(x)
    out_m9 = jnp.zeros_like(x)
    for t, d in enumerate(shifts):
        ra = pa2[:, L - d:2 * L - d]                 # ra[:, i] = p_avg[:, i - d]
        rm = pm2[:, L - d:2 * L - d]
        w1 = m1_ref[t:t + 1, :]                      # (1, L), broadcasts over channels
        w9 = m9_ref[t:t + 1, :]
        out_a1 = out_a1 + w1 * ra
        out_m1 = out_m1 + w1 * rm
        out_a9 = out_a9 + w9 * ra
        out_m9 = out_m9 + w9 * rm

    dt = o_ref.dtype
    o_ref[0, 0, :, :] = (out_a1 + x).astype(dt)      # up(avgpool stride 1) + x
    o_ref[0, 1, :, :] = (out_a9 + x).astype(dt)      # up(avgpool stride 9) + x
    o_ref[0, 2, :, :] = (out_m1 + x).astype(dt)      # up(maxpool stride 1) + x
    o_ref[0, 3, :, :] = (out_m9 + x).astype(dt)      # up(maxpool stride 9) + x


def _pick_channel_tile(C: int) -> int:
    # Largest multiple-of-8 tile that divides C (keeps the (8,128) sublane rule
    # and gives the grid several steps); fall back to the full C otherwise.
    for tc in (256, 128, 64, 32, 16, 8):
        if C % tc == 0:
            return tc
    return C


def multiscale(x, pool_kernel: int = 9, size=None):
    """Fused Pallas equivalent of MultiScale.forward: [N, C, L] -> [N, 4C, L]."""
    N, C, L = x.shape
    K = pool_kernel
    if size is None:
        size = L
    # The residual adds in the torch forward only work when Upsample size == L.
    assert size == L, "MultiScale requires Upsample size == input length"
    assert L >= K, f"input length {L} must be >= pool kernel {K}"

    shifts, m1_np, m9_np = _build_upsample_masks(L, K)
    T = len(shifts)
    m1 = jnp.asarray(m1_np)
    m9 = jnp.asarray(m9_np)

    tc = _pick_channel_tile(C)
    grid = (N, C // tc)

    kernel = functools.partial(_multiscale_kernel, K=K, shifts=shifts)

    itemsize = np.dtype(x.dtype).itemsize
    cost = pl.CostEstimate(
        flops=N * C * L * (2 * K + 8 * T + 4),
        transcendentals=0,
        bytes_accessed=(5 * N * C * L + 2 * T * L) * itemsize,
    )

    out = pl.pallas_call(
        kernel,
        out_shape=jax.ShapeDtypeStruct((N, 4, C, L), x.dtype),
        grid_spec=pltpu.PrefetchScalarGridSpec(
            num_scalar_prefetch=0,
            grid=grid,
            in_specs=[
                pl.BlockSpec((1, tc, L), lambda n, c: (n, c, 0)),   # x tile
                pl.BlockSpec((T, L), lambda n, c: (0, 0)),          # stride-1 upsample masks
                pl.BlockSpec((T, L), lambda n, c: (0, 0)),          # stride-K upsample masks
            ],
            out_specs=pl.BlockSpec((1, 4, tc, L), lambda n, c: (n, 0, c, 0)),
        ),
        compiler_params=pltpu.CompilerParams(
            dimension_semantics=("parallel", "parallel"),
        ),
        cost_estimate=cost,
    )(x, m1, m9)

    # (N, 4, C, L) -> (N, 4C, L) reproduces torch.cat([...], dim=1) ordering for free.
    return out.reshape(N, 4 * C, L)


def _reference(x, pool_kernel: int = 9):
    """Pure-JAX mirror of the torch module (for correctness checking)."""
    K = pool_kernel
    N, C, L = x.shape
    Ls1 = L - K + 1
    Ls9 = (L - K) // K + 1
    win1 = jnp.stack([x[..., k:k + Ls1] for k in range(K)], axis=-1)        # (N,C,Ls1,K)
    avg1 = win1.sum(axis=-1) * (1.0 / K)
    max1 = win1.max(axis=-1)
    starts = np.arange(Ls9) * K
    win9 = jnp.stack([x[..., starts + k] for k in range(K)], axis=-1)       # (N,C,Ls9,K)
    avg9 = win9.sum(axis=-1) * (1.0 / K)
    max9 = win9.max(axis=-1)

    def up(p):
        return p[..., _nearest_src_indices(L, p.shape[-1])]

    res = [up(avg1) + x, up(avg9) + x, up(max1) + x, up(max9) + x]
    return jnp.concatenate(res, axis=1)


if __name__ == "__main__":
    key = jax.random.PRNGKey(0)
    batch, channels, length = 2, 16, 63
    x = jax.random.normal(key, (batch, channels, length), dtype=jnp.float32)

    out = multiscale(x)
    out = jax.block_until_ready(out)

    ref = _reference(x)
    assert out.shape == (batch, 4 * channels, length), out.shape
    assert jnp.allclose(out, ref, atol=1e-5, rtol=1e-5), "mismatch vs reference"

    print("KERNEL_OK")
</pallas_src>

<mosaic_0001>
module attributes {stable_mosaic.version = 11 : i64} {
  func.func @_multiscale_kernel(%arg0: i32, %arg1: i32, %arg2: memref<1x16x63xf32, #tpu.memory_space<vmem>>, %arg3: memref<9x63xf32, #tpu.memory_space<vmem>>, %arg4: memref<9x63xf32, #tpu.memory_space<vmem>>, %arg5: memref<1x4x16x63xf32, #tpu.memory_space<vmem>>) attributes {dimension_semantics = [#tpu.dimension_semantics<parallel>, #tpu.dimension_semantics<parallel>], iteration_bounds = array<i64: 2, 1>, scalar_prefetch = 0 : i64, scratch_operands = 0 : i64, tpu.core_type = #tpu.core_type<tc>, window_params = [{transform_indices = @transform_0, window_bounds = array<i64: 1, 16, 63>}, {pipeline_mode = #tpu.pipeline_mode<synchronous>, transform_indices = @transform_1, window_bounds = array<i64: 9, 63>}, {pipeline_mode = #tpu.pipeline_mode<synchronous>, transform_indices = @transform_2, window_bounds = array<i64: 9, 63>}, {transform_indices = @transform_3, window_bounds = array<i64: 1, 4, 16, 63>}]} {
    %c0 = arith.constant 0 : index
    %c0_0 = arith.constant 0 : index
    %c0_1 = arith.constant 0 : index
    %0 = vector.load %arg2[%c0, %c0_0, %c0_1] : memref<1x16x63xf32, #tpu.memory_space<vmem>>, vector<1x16x63xf32>
    %1 = vector.shape_cast %0 : vector<1x16x63xf32> to vector<16x63xf32>
    %2 = tpu.concatenate %1, %1 in 1 : vector<16x63xf32>, vector<16x63xf32> -> vector<16x126xf32>
    %3 = vector.extract_strided_slice %2 {offsets = [0, 1], sizes = [16, 63], strides = [1, 1]} : vector<16x126xf32> to vector<16x63xf32>
    %4 = arith.addf %1, %3 : vector<16x63xf32>
    %5 = arith.maximumf %1, %3 : vector<16x63xf32>
    %6 = vector.extract_strided_slice %2 {offsets = [0, 2], sizes = [16, 63], strides = [1, 1]} : vector<16x126xf32> to vector<16x63xf32>
    %7 = arith.addf %4, %6 : vector<16x63xf32>
    %8 = arith.maximumf %5, %6 : vector<16x63xf32>
    %9 = vector.extract_strided_slice %2 {offsets = [0, 3], sizes = [16, 63], strides = [1, 1]} : vector<16x126xf32> to vector<16x63xf32>
    %10 = arith.addf %7, %9 : vector<16x63xf32>
    %11 = arith.maximumf %8, %9 : vector<16x63xf32>
    %12 = vector.extract_strided_slice %2 {offsets = [0, 4], sizes = [16, 63], strides = [1, 1]} : vector<16x126xf32> to vector<16x63xf32>
    %13 = arith.addf %10, %12 : vector<16x63xf32>
    %14 = arith.maximumf %11, %12 : vector<16x63xf32>
    %15 = vector.extract_strided_slice %2 {offsets = [0, 5], sizes = [16, 63], strides = [1, 1]} : vector<16x126xf32> to vector<16x63xf32>
    %16 = arith.addf %13, %15 : vector<16x63xf32>
    %17 = arith.maximumf %14, %15 : vector<16x63xf32>
    %18 = vector.extract_strided_slice %2 {offsets = [0, 6], sizes = [16, 63], strides = [1, 1]} : vector<16x126xf32> to vector<16x63xf32>
    %19 = arith.addf %16, %18 : vector<16x63xf32>
    %20 = arith.maximumf %17, %18 : vector<16x63xf32>
    %21 = vector.extract_strided_slice %2 {offsets = [0, 7], sizes = [16, 63], strides = [1, 1]} : vector<16x126xf32> to vector<16x63xf32>
    %22 = arith.addf %19, %21 : vector<16x63xf32>
    %23 = arith.maximumf %20, %21 : vector<16x63xf32>
    %24 = vector.extract_strided_slice %2 {offsets = [0, 8], sizes = [16, 63], strides = [1, 1]} : vector<16x126xf32> to vector<16x63xf32>
    %25 = arith.addf %22, %24 : vector<16x63xf32>
    %26 = arith.maximumf %23, %24 : vector<16x63xf32>
    %cst = arith.constant 0.111111112 : f32
    %27 = vector.broadcast %cst : f32 to vector<16x63xf32>
    %28 = arith.mulf %25, %27 : vector<16x63xf32>
    %29 = tpu.concatenate %28, %28 in 1 : vector<16x63xf32>, vector<16x63xf32> -> vector<16x126xf32>
    %30 = tpu.concatenate %26, %26 in 1 : vector<16x63xf32>, vector<16x63xf32> -> vector<16x126xf32>
    %cst_2 = arith.constant 0.000000e+00 : f32
    %31 = vector.broadcast %cst_2 : f32 to vector<16x63xf32>
    %cst_3 = arith.constant 0.000000e+00 : f32
    %32 = vector.broadcast %cst_3 : f32 to vector<16x63xf32>
    %cst_4 = arith.constant 0.000000e+00 : f32
    %33 = vector.broadcast %cst_4 : f32 to vector<16x63xf32>
    %cst_5 = arith.constant 0.000000e+00 : f32
    %34 = vector.broadcast %cst_5 : f32 to vector<16x63xf32>
    %35 = vector.extract_strided_slice %29 {offsets = [0, 63], sizes = [16, 63], strides = [1, 1]} : vector<16x126xf32> to vector<16x63xf32>
    %36 = vector.extract_strided_slice %30 {offsets = [0, 63], sizes = [16, 63], strides = [1, 1]} : vector<16x126xf32> to vector<16x63xf32>
    %c0_6 = arith.constant 0 : index
    %c0_7 = arith.constant 0 : index
    %37 = vector.load %arg3[%c0_6, %c0_7] : memref<9x63xf32, #tpu.memory_space<vmem>>, vector<1x63xf32>
    %c0_8 = arith.constant 0 : index
    %c0_9 = arith.constant 0 : index
    %38 = vector.load %arg4[%c0_8, %c0_9] : memref<9x63xf32, #tpu.memory_space<vmem>>, vector<1x63xf32>
    %39 = vector.broadcast %37 : vector<1x63xf32> to vector<16x63xf32>
    %40 = arith.mulf %39, %35 : vector<16x63xf32>
    %41 = arith.addf %31, %40 : vector<16x63xf32>
    %42 = vector.broadcast %37 : vector<1x63xf32> to vector<16x63xf32>
    %43 = arith.mulf %42, %36 : vector<16x63xf32>
    %44 = arith.addf %33, %43 : vector<16x63xf32>
    %45 = vector.broadcast %38 : vector<1x63xf32> to vector<16x63xf32>
    %46 = arith.mulf %45, %35 : vector<16x63xf32>
    %47 = arith.addf %32, %46 : vector<16x63xf32>
    %48 = vector.broadcast %38 : vector<1x63xf32> to vector<16x63xf32>
    %49 = arith.mulf %48, %36 : vector<16x63xf32>
    %50 = arith.addf %34, %49 : vector<16x63xf32>
    %51 = vector.extract_strided_slice %29 {offsets = [0, 62], sizes = [16, 63], strides = [1, 1]} : vector<16x126xf32> to vector<16x63xf32>
    %52 = vector.extract_strided_slice %30 {offsets = [0, 62], sizes = [16, 63], strides = [1, 1]} : vector<16x126xf32> to vector<16x63xf32>
    %c1 = arith.constant 1 : index
    %c0_10 = arith.constant 0 : index
    %53 = vector.load %arg3[%c1, %c0_10] : memref<9x63xf32, #tpu.memory_space<vmem>>, vector<1x63xf32>
    %c1_11 = arith.constant 1 : index
    %c0_12 = arith.constant 0 : index
    %54 = vector.load %arg4[%c1_11, %c0_12] : memref<9x63xf32, #tpu.memory_space<vmem>>, vector<1x63xf32>
    %55 = vector.broadcast %53 : vector<1x63xf32> to vector<16x63xf32>
    %56 = arith.mulf %55, %51 : vector<16x63xf32>
    %57 = arith.addf %41, %56 : vector<16x63xf32>
    %58 = vector.broadcast %53 : vector<1x63xf32> to vector<16x63xf32>
    %59 = arith.mulf %58, %52 : vector<16x63xf32>
    %60 = arith.addf %44, %59 : vector<16x63xf32>
    %61 = vector.broadcast %54 : vector<1x63xf32> to vector<16x63xf32>
    %62 = arith.mulf %61, %51 : vector<16x63xf32>
    %63 = arith.addf %47, %62 : vector<16x63xf32>
    %64 = vector.broadcast %54 : vector<1x63xf32> to vector<16x63xf32>
    %65 = arith.mulf %64, %52 : vector<16x63xf32>
    %66 = arith.addf %50, %65 : vector<16x63xf32>
    %67 = vector.extract_strided_slice %29 {offsets = [0, 61], sizes = [16, 63], strides = [1, 1]} : vector<16x126xf32> to vector<16x63xf32>
    %68 = vector.extract_strided_slice %30 {offsets = [0, 61], sizes = [16, 63], strides = [1, 1]} : vector<16x126xf32> to vector<16x63xf32>
    %c2 = arith.constant 2 : index
    %c0_13 = arith.constant 0 : index
    %69 = vector.load %arg3[%c2, %c0_13] : memref<9x63xf32, #tpu.memory_space<vmem>>, vector<1x63xf32>
    %c2_14 = arith.constant 2 : index
    %c0_15 = arith.constant 0 : index
    %70 = vector.load %arg4[%c2_14, %c0_15] : memref<9x63xf32, #tpu.memory_space<vmem>>, vector<1x63xf32>
    %71 = vector.broadcast %69 : vector<1x63xf32> to vector<16x63xf32>
    %72 = arith.mulf %71, %67 : vector<16x63xf32>
    %73 = arith.addf %57, %72 : vector<16x63xf32>
    %74 = vector.broadcast %69 : vector<1x63xf32> to vector<16x63xf32>
    %75 = arith.mulf %74, %68 : vector<16x63xf32>
    %76 = arith.addf %60, %75 : vector<16x63xf32>
    %77 = vector.broadcast %70 : vector<1x63xf32> to vector<16x63xf32>
    %78 = arith.mulf %77, %67 : vector<16x63xf32>
    %79 = arith.addf %63, %78 : vector<16x63xf32>
    %80 = vector.broadcast %70 : vector<1x63xf32> to vector<16x63xf32>
    %81 = arith.mulf %80, %68 : vector<16x63xf32>
    %82 = arith.addf %66, %81 : vector<16x63xf32>
    %83 = vector.extract_strided_slice %29 {offsets = [0, 60], sizes = [16, 63], strides = [1, 1]} : vector<16x126xf32> to vector<16x63xf32>
    %84 = vector.extract_strided_slice %30 {offsets = [0, 60], sizes = [16, 63], strides = [1, 1]} : vector<16x126xf32> to vector<16x63xf32>
    %c3 = arith.constant 3 : index
    %c0_16 = arith.constant 0 : index
    %85 = vector.load %arg3[%c3, %c0_16] : memref<9x63xf32, #tpu.memory_space<vmem>>, vector<1x63xf32>
    %c3_17 = arith.constant 3 : index
    %c0_18 = arith.constant 0 : index
    %86 = vector.load %arg4[%c3_17, %c0_18] : memref<9x63xf32, #tpu.memory_space<vmem>>, vector<1x63xf32>
    %87 = vector.broadcast %85 : vector<1x63xf32> to vector<16x63xf32>
    %88 = arith.mulf %87, %83 : vector<16x63xf32>
    %89 = arith.addf %73, %88 : vector<16x63xf32>
    %90 = vector.broadcast %85 : vector<1x63xf32> to vector<16x63xf32>
    %91 = arith.mulf %90, %84 : vector<16x63xf32>
    %92 = arith.addf %76, %91 : vector<16x63xf32>
    %93 = vector.broadcast %86 : vector<1x63xf32> to vector<16x63xf32>
    %94 = arith.mulf %93, %83 : vector<16x63xf32>
    %95 = arith.addf %79, %94 : vector<16x63xf32>
    %96 = vector.broadcast %86 : vector<1x63xf32> to vector<16x63xf32>
    %97 = arith.mulf %96, %84 : vector<16x63xf32>
    %98 = arith.addf %82, %97 : vector<16x63xf32>
    %99 = vector.extract_strided_slice %29 {offsets = [0, 59], sizes = [16, 63], strides = [1, 1]} : vector<16x126xf32> to vector<16x63xf32>
    %100 = vector.extract_strided_slice %30 {offsets = [0, 59], sizes = [16, 63], strides = [1, 1]} : vector<16x126xf32> to vector<16x63xf32>
    %c4 = arith.constant 4 : index
    %c0_19 = arith.constant 0 : index
    %101 = vector.load %arg3[%c4, %c0_19] : memref<9x63xf32, #tpu.memory_space<vmem>>, vector<1x63xf32>
    %c4_20 = arith.constant 4 : index
    %c0_21 = arith.constant 0 : index
    %102 = vector.load %arg4[%c4_20, %c0_21] : memref<9x63xf32, #tpu.memory_space<vmem>>, vector<1x63xf32>
    %103 = vector.broadcast %101 : vector<1x63xf32> to vector<16x63xf32>
    %104 = arith.mulf %103, %99 : vector<16x63xf32>
    %105 = arith.addf %89, %104 : vector<16x63xf32>
    %106 = vector.broadcast %101 : vector<1x63xf32> to vector<16x63xf32>
    %107 = arith.mulf %106, %100 : vector<16x63xf32>
    %108 = arith.addf %92, %107 : vector<16x63xf32>
    %109 = vector.broadcast %102 : vector<1x63xf32> to vector<16x63xf32>
    %110 = arith.mulf %109, %99 : vector<16x63xf32>
    %111 = arith.addf %95, %110 : vector<16x63xf32>
    %112 = vector.broadcast %102 : vector<1x63xf32> to vector<16x63xf32>
    %113 = arith.mulf %112, %100 : vector<16x63xf32>
    %114 = arith.addf %98, %113 : vector<16x63xf32>
    %115 = vector.extract_strided_slice %29 {offsets = [0, 58], sizes = [16, 63], strides = [1, 1]} : vector<16x126xf32> to vector<16x63xf32>
    %116 = vector.extract_strided_slice %30 {offsets = [0, 58], sizes = [16, 63], strides = [1, 1]} : vector<16x126xf32> to vector<16x63xf32>
    %c5 = arith.constant 5 : index
    %c0_22 = arith.constant 0 : index
    %117 = vector.load %arg3[%c5, %c0_22] : memref<9x63xf32, #tpu.memory_space<vmem>>, vector<1x63xf32>
    %c5_23 = arith.constant 5 : index
    %c0_24 = arith.constant 0 : index
    %118 = vector.load %arg4[%c5_23, %c0_24] : memref<9x63xf32, #tpu.memory_space<vmem>>, vector<1x63xf32>
    %119 = vector.broadcast %117 : vector<1x63xf32> to vector<16x63xf32>
    %120 = arith.mulf %119, %115 : vector<16x63xf32>
    %121 = arith.addf %105, %120 : vector<16x63xf32>
    %122 = vector.broadcast %117 : vector<1x63xf32> to vector<16x63xf32>
    %123 = arith.mulf %122, %116 : vector<16x63xf32>
    %124 = arith.addf %108, %123 : vector<16x63xf32>
    %125 = vector.broadcast %118 : vector<1x63xf32> to vector<16x63xf32>
    %126 = arith.mulf %125, %115 : vector<16x63xf32>
    %127 = arith.addf %111, %126 : vector<16x63xf32>
    %128 = vector.broadcast %118 : vector<1x63xf32> to vector<16x63xf32>
    %129 = arith.mulf %128, %116 : vector<16x63xf32>
    %130 = arith.addf %114, %129 : vector<16x63xf32>
    %131 = vector.extract_strided_slice %29 {offsets = [0, 57], sizes = [16, 63], strides = [1, 1]} : vector<16x126xf32> to vector<16x63xf32>
    %132 = vector.extract_strided_slice %30 {offsets = [0, 57], sizes = [16, 63], strides = [1, 1]} : vector<16x126xf32> to vector<16x63xf32>
    %c6 = arith.constant 6 : index
    %c0_25 = arith.constant 0 : index
    %133 = vector.load %arg3[%c6, %c0_25] : memref<9x63xf32, #tpu.memory_space<vmem>>, vector<1x63xf32>
    %c6_26 = arith.constant 6 : index
    %c0_27 = arith.constant 0 : index
    %134 = vector.load %arg4[%c6_26, %c0_27] : memref<9x63xf32, #tpu.memory_space<vmem>>, vector<1x63xf32>
    %135 = vector.broadcast %133 : vector<1x63xf32> to vector<16x63xf32>
    %136 = arith.mulf %135, %131 : vector<16x63xf32>
    %137 = arith.addf %121, %136 : vector<16x63xf32>
    %138 = vector.broadcast %133 : vector<1x63xf32> to vector<16x63xf32>
    %139 = arith.mulf %138, %132 : vector<16x63xf32>
    %140 = arith.addf %124, %139 : vector<16x63xf32>
    %141 = vector.broadcast %134 : vector<1x63xf32> to vector<16x63xf32>
    %142 = arith.mulf %141, %131 : vector<16x63xf32>
    %143 = arith.addf %127, %142 : vector<16x63xf32>
    %144 = vector.broadcast %134 : vector<1x63xf32> to vector<16x63xf32>
    %145 = arith.mulf %144, %132 : vector<16x63xf32>
    %146 = arith.addf %130, %145 : vector<16x63xf32>
    %147 = vector.extract_strided_slice %29 {offsets = [0, 56], sizes = [16, 63], strides = [1, 1]} : vector<16x126xf32> to vector<16x63xf32>
    %148 = vector.extract_strided_slice %30 {offsets = [0, 56], sizes = [16, 63], strides = [1, 1]} : vector<16x126xf32> to vector<16x63xf32>
    %c7 = arith.constant 7 : index
    %c0_28 = arith.constant 0 : index
    %149 = vector.load %arg3[%c7, %c0_28] : memref<9x63xf32, #tpu.memory_space<vmem>>, vector<1x63xf32>
    %c7_29 = arith.constant 7 : index
    %c0_30 = arith.constant 0 : index
    %150 = vector.load %arg4[%c7_29, %c0_30] : memref<9x63xf32, #tpu.memory_space<vmem>>, vector<1x63xf32>
    %151 = vector.broadcast %149 : vector<1x63xf32> to vector<16x63xf32>
    %152 = arith.mulf %151, %147 : vector<16x63xf32>
    %153 = arith.addf %137, %152 : vector<16x63xf32>
    %154 = vector.broadcast %149 : vector<1x63xf32> to vector<16x63xf32>
    %155 = arith.mulf %154, %148 : vector<16x63xf32>
    %156 = arith.addf %140, %155 : vector<16x63xf32>
    %157 = vector.broadcast %150 : vector<1x63xf32> to vector<16x63xf32>
    %158 = arith.mulf %157, %147 : vector<16x63xf32>
    %159 = arith.addf %143, %158 : vector<16x63xf32>
    %160 = vector.broadcast %150 : vector<1x63xf32> to vector<16x63xf32>
    %161 = arith.mulf %160, %148 : vector<16x63xf32>
    %162 = arith.addf %146, %161 : vector<16x63xf32>
    %163 = vector.extract_strided_slice %29 {offsets = [0, 55], sizes = [16, 63], strides = [1, 1]} : vector<16x126xf32> to vector<16x63xf32>
    %164 = vector.extract_strided_slice %30 {offsets = [0, 55], sizes = [16, 63], strides = [1, 1]} : vector<16x126xf32> to vector<16x63xf32>
    %c8 = arith.constant 8 : index
    %c0_31 = arith.constant 0 : index
    %165 = vector.load %arg3[%c8, %c0_31] : memref<9x63xf32, #tpu.memory_space<vmem>>, vector<1x63xf32>
    %c8_32 = arith.constant 8 : index
    %c0_33 = arith.constant 0 : index
    %166 = vector.load %arg4[%c8_32, %c0_33] : memref<9x63xf32, #tpu.memory_space<vmem>>, vector<1x63xf32>
    %167 = vector.broadcast %165 : vector<1x63xf32> to vector<16x63xf32>
    %168 = arith.mulf %167, %163 : vector<16x63xf32>
    %169 = arith.addf %153, %168 : vector<16x63xf32>
    %170 = vector.broadcast %165 : vector<1x63xf32> to vector<16x63xf32>
    %171 = arith.mulf %170, %164 : vector<16x63xf32>
    %172 = arith.addf %156, %171 : vector<16x63xf32>
    %173 = vector.broadcast %166 : vector<1x63xf32> to vector<16x63xf32>
    %174 = arith.mulf %173, %163 : vector<16x63xf32>
    %175 = arith.addf %159, %174 : vector<16x63xf32>
    %176 = vector.broadcast %166 : vector<1x63xf32> to vector<16x63xf32>
    %177 = arith.mulf %176, %164 : vector<16x63xf32>
    %178 = arith.addf %162, %177 : vector<16x63xf32>
    %179 = arith.addf %169, %1 : vector<16x63xf32>
    %c0_34 = arith.constant 0 : index
    %c0_35 = arith.constant 0 : index
    %c0_36 = arith.constant 0 : index
    %c0_37 = arith.constant 0 : index
    %180 = vector.load %arg5[%c0_34, %c0_35, %c0_36, %c0_37] : memref<1x4x16x63xf32, #tpu.memory_space<vmem>>, vector<1x1x16x63xf32>
    %181 = vector.shape_cast %180 : vector<1x1x16x63xf32> to vector<16x63xf32>
    %182 = vector.shape_cast %179 : vector<16x63xf32> to vector<1x1x16x63xf32>
    tpu.vector_store %arg5[%c0_34, %c0_35, %c0_36, %c0_37], %182 {strides = array<i32>} : memref<1x4x16x63xf32, #tpu.memory_space<vmem>>, vector<1x1x16x63xf32>,
    %183 = arith.addf %175, %1 : vector<16x63xf32>
    %c0_38 = arith.constant 0 : index
    %c1_39 = arith.constant 1 : index
    %c0_40 = arith.constant 0 : index
    %c0_41 = arith.constant 0 : index
    %184 = vector.load %arg5[%c0_38, %c1_39, %c0_40, %c0_41] : memref<1x4x16x63xf32, #tpu.memory_space<vmem>>, vector<1x1x16x63xf32>
    %185 = vector.shape_cast %184 : vector<1x1x16x63xf32> to vector<16x63xf32>
    %186 = vector.shape_cast %183 : vector<16x63xf32> to vector<1x1x16x63xf32>
    tpu.vector_store %arg5[%c0_38, %c1_39, %c0_40, %c0_41], %186 {strides = array<i32>} : memref<1x4x16x63xf32, #tpu.memory_space<vmem>>, vector<1x1x16x63xf32>,
    %187 = arith.addf %172, %1 : vector<16x63xf32>
    %c0_42 = arith.constant 0 : index
    %c2_43 = arith.constant 2 : index
    %c0_44 = arith.constant 0 : index
    %c0_45 = arith.constant 0 : index
    %188 = vector.load %arg5[%c0_42, %c2_43, %c0_44, %c0_45] : memref<1x4x16x63xf32, #tpu.memory_space<vmem>>, vector<1x1x16x63xf32>
    %189 = vector.shape_cast %188 : vector<1x1x16x63xf32> to vector<16x63xf32>
    %190 = vector.shape_cast %187 : vector<16x63xf32> to vector<1x1x16x63xf32>
    tpu.vector_store %arg5[%c0_42, %c2_43, %c0_44, %c0_45], %190 {strides = array<i32>} : memref<1x4x16x63xf32, #tpu.memory_space<vmem>>, vector<1x1x16x63xf32>,
    %191 = arith.addf %178, %1 : vector<16x63xf32>
    %c0_46 = arith.constant 0 : index
    %c3_47 = arith.constant 3 : index
    %c0_48 = arith.constant 0 : index
    %c0_49 = arith.constant 0 : index
    %192 = vector.load %arg5[%c0_46, %c3_47, %c0_48, %c0_49] : memref<1x4x16x63xf32, #tpu.memory_space<vmem>>, vector<1x1x16x63xf32>
    %193 = vector.shape_cast %192 : vector<1x1x16x63xf32> to vector<16x63xf32>
    %194 = vector.shape_cast %191 : vector<16x63xf32> to vector<1x1x16x63xf32>
    tpu.vector_store %arg5[%c0_46, %c3_47, %c0_48, %c0_49], %194 {strides = array<i32>} : memref<1x4x16x63xf32, #tpu.memory_space<vmem>>, vector<1x1x16x63xf32>,
    return
  }
  func.func @transform_0(%arg0: i32, %arg1: i32) -> (i32, i32, i32) {
    %c0_i32 = arith.constant 0 : i32
    %c0_i32_0 = arith.constant 0 : i32
    return %arg0, %arg1, %c0_i32 : i32, i32, i32
  }
  func.func @transform_1(%arg0: i32, %arg1: i32) -> (i32, i32) {
    %c0_i32 = arith.constant 0 : i32
    %c0_i32_0 = arith.constant 0 : i32
    %c0_i32_1 = arith.constant 0 : i32
    return %c0_i32, %c0_i32_0 : i32, i32
  }
  func.func @transform_2(%arg0: i32, %arg1: i32) -> (i32, i32) {
    %c0_i32 = arith.constant 0 : i32
    %c0_i32_0 = arith.constant 0 : i32
    %c0_i32_1 = arith.constant 0 : i32
    return %c0_i32, %c0_i32_0 : i32, i32
  }
  func.func @transform_3(%arg0: i32, %arg1: i32) -> (i32, i32, i32, i32) {
    %c0_i32 = arith.constant 0 : i32
    %c0_i32_0 = arith.constant 0 : i32
    %c0_i32_1 = arith.constant 0 : i32
    return %arg0, %c0_i32, %arg1, %c0_i32_0 : i32, i32, i32, i32
  }
}

</mosaic_0001>

<bundles_post_ra>
// kernel: tpu_custom_call.1
= control target key start
LH: loop header
LB: loop body
LE: loop exit
PB: predicated region body
PF: predicated region fallthrough
CT: control target
= control target key end

     0   :  { %8 = vsyncpa [#allocation3], 0  ;;  %s1591_s0 = inlined_call_operand.hbm [shape: f32[2,16,63], index: 0, kind: input, shape index: {}]   ;;  %s1592_s1 = inlined_call_operand.hbm [shape: f32[9,63], index: 1, kind: input, shape index: {}]   ;;  %s1593_s2 = inlined_call_operand.hbm [shape: f32[9,63], index: 2, kind: input, shape index: {}]   ;;  %s1594_s3 = inlined_call_operand.hbm [shape: f32[2,4,16,63], index: 3, kind: output, shape index: {}]  }
   0x1   :  { %10 = vsyncpa [#allocation3 + $0x1], 0 }
   0x2   :  { %11 = vsyncpa [#allocation6], 0 }
   0x3   :  { %12 = vsyncpa [#allocation4], 0 }
   0x4   :  { %14 = vsyncpa [#allocation4 + $0x1], 0  ;;  %s1204_s12 = smov 0   ;;  %s1206_s13 = smov 0  }
   0x5   :  { %s1208_s14 = smov 0   ;;  %s1210_s15 = smov 0  }
   0x6   :  { %s1212_s16 = smov 0   ;;  %s1214_s17 = smov 0  }
   0x7 LB: > { %s842_s18 = sadd.s32 4294967295, %s1156_s17   ;;  %s843_s19 = sadd.s32 4294967294, %s1156_s17   ;;  %s1156_s17 = sphi %s1214_s17, %s20_s17   ;;  %s1152_s16 = sphi %s1212_s16, %s1611_s16   ;;  %s1148_s15 = sphi %s1210_s15, %s1610_s15   ;;  %s1144_s14 = sphi %s1208_s14, %s1609_s14   ;;  %s1140_s13 = sphi %s1206_s13, %s1608_s13   ;;  %s1136_s12 = sphi %s1204_s12, %s1607_s12  }
   0x8   : > { %p54_p0 = scmp.ne.s32.totalorder %s1140_s13, %s1136_s12  ;;  %p1238_p1 = scmp.eq.s32.totalorder %s842_s18, 0 }
   0x9   : > { %p1242_p2 = scmp.eq.s32.totalorder %s842_s18, 1  ;;  %p128_p3 = scmp.eq.s32.totalorder %s843_s19, 1 }
   0xa   : > { %p1248_p4 = por %p1238_p1, %p54_p0  ;;  %p844_p5 = scmp.ge.s32.totalorder %s1156_s17, 1 }
   0xb   : > { %p1253_p6 = por %p128_p3, %p54_p0  ;;  %p135_p7 = scmp.lt.s32.totalorder %s1156_s17, 3 }
   0xc   : > { %s1158_s25 = smov [#allocation5]   ;;  %s1159_s28 = smov [#allocation7]  }
   0xd   : > { %s1599_s23 = scalar_select %p1253_p6, 1, 0 }
   0xe   : > { %p1258_p8 = pnand %p844_p5, %p135_p7  ;;  %s147_s26 = sshll.u32 %s1158_s25, 4  ;;  %s148_s26 = int_to_ptr.vmem [resolvable:$true] %s147_s26 }
   0xf   : > { %s160_s29 = sshll.u32 %s1159_s28, 4  ;;  %s1003_s30 = scalar_lea.vmem %s148_s26, 256  ;;  %s161_s29 = int_to_ptr.vmem [resolvable:$true] %s160_s29 }
  0x10   : > { %p899_p9 = pneg %p1258_p8  ;;  %p1004_p13 = scmp.ne.s32.totalorder %s148_s26, %s1003_s30 }
  0x11   : > { %p1011_p5 = scmp.lt.s32.totalorder %s148_s26, %s148_s26  ;;  %p1012_p7 = scmp.lt.s32.totalorder %s1003_s30, %s1003_s30 }
  0x12   : > { %p1267_p11 = pnand %p899_p9, %p1238_p1 }
  0x13   : > { %p1013_p10 = por %p1012_p7, %p1011_p5 }
  0x14   : > { %p994_p12 = pneg %p1267_p11 }
  0x16   : > { %p1006_p0 = pnand %p1004_p13, %p994_p12 }
  0x18   : > { %p1007_p3 = pneg %p1006_p0 }
  0x1a   : > { %p1014_p9 = pnand %p1013_p10, %p1007_p3 }
  0x1c   : > { %1017 = shalt.err (!%p1014_p9)
}
  0x1d   : > { %s1595_s4 = smov 128   ;;  %s1161_s5 = smov 8  }
  0x1e   : > { %902 = dma.hbm_to_vmem [thread:$0]  (!%p1267_p11), %s1592_s1, 256, %s148_s26, [#allocation6], %s1595_s4, %s1595_s4, %s1161_s5  }
  0x1f   : > { %s1029_s8 = scalar_lea.vmem %s161_s29, 256  ;;  %p1037_p10 = scmp.lt.s32.totalorder %s161_s29, %s161_s29 }
  0x20   : > { %p1030_p13 = scmp.ne.s32.totalorder %s161_s29, %s1029_s8  ;;  %p1038_p3 = scmp.lt.s32.totalorder %s1029_s8, %s1029_s8 }
  0x22   : > { %p1032_p0 = pnand %p1030_p13, %p994_p12  ;;  %p1039_p7 = por %p1038_p3, %p1037_p10 }
  0x24   : > { %p1033_p5 = pneg %p1032_p0 }
  0x26   : > { %p1040_p9 = pnand %p1039_p7, %p1033_p5 }
  0x28   : > { %1043 = shalt.err (!%p1040_p9)
}
  0x29   : > { %905 = dma.hbm_to_vmem [thread:$0]  (!%p1267_p11), %s1593_s2, 256, %s161_s29, [#allocation6], %s1595_s4, %s1595_s4, %s1161_s5  }
  0x2a   : > { %s32_s11 = sadd.s32 1, %s1152_s16  ;;  %s41_s18 = sadd.s32 1, %s1144_s14 }
  0x2b   : > { %p34_p12 = scmp.ge.s32.totalorder %s32_s11, 2  ;;  %p48_p13 = scmp.ne.s32.totalorder %s1144_s14, %s1140_s13 }
  0x2c   : > { %p49_p0 = scmp.eq.s32.totalorder %s1156_s17, 0  ;;  %p916_p5 = scmp.lt.s32.totalorder %s1156_s17, 2 }
  0x2d   : > { %s1613_s11 = smov (%p34_p12, %s32_s11), 0  ;;  %p1305_p3 = por %p1242_p2, %p48_p13 }
  0x2e   : > { %p50_p10 = por %p49_p0, %p48_p13  ;;  %s36_s25 = ssub.s32 %s1152_s16, %s1613_s11 }
  0x2f   : > { %s174_s26 = sand.u32 1, %s1144_s14   ;;  %p39_p7 = scmp.eq.s32.totalorder %s36_s25, 0 }
  0x30   : > { %s848_s27 = sshll.u32 %s174_s26, 4  ;;  %s885_s28 = sshll.u32 %s1152_s16, 8 }
  0x31   : > { %s1314_s29 = scalar_select %p39_p7, %s1144_s14, %s41_s18  }
  0x32   : > { %s186_s7 = scalar_lea.hbm %s1591_s0, %s885_s28  ;;  %s178_s8 = scalar_lea.vmem [#allocation2], %s848_s27 }
  0x33   : > { %s187_s9 = sshll.u32 %s178_s8, 4  ;;  %p1321_p11 = pnand %p916_p5, %p50_p10  ;;  %s188_s9 = int_to_ptr.vmem [resolvable:$true] %s187_s9 }
  0x34   : > { %s175_s10 = scalar_lea.sflag [#allocation3], %s174_s26  ;;  %s1057_s25 = scalar_lea.vmem %s188_s9, 256 }
  0x35   : > { %p1046_p2 = pneg %p1321_p11  ;;  %p1058_p9 = scmp.ne.s32.totalorder %s188_s9, %s1057_s25 }
  0x36   : > { %s1162_s18 = smov [#allocation2]  }
  0x37   : > { %p1060_p12 = pnand %p1058_p9, %p1046_p2  ;;  %s1062_s4 = sshll.u32 %s1162_s18, 4  ;;  %s1063_s4 = int_to_ptr.vmem [resolvable:$false] %s1062_s4 }
  0x38   : > { %s1064_s28 = scalar_lea.vmem %s1063_s4, 512  ;;  %p1065_p0 = scmp.lt.s32.totalorder %s188_s9, %s1063_s4 }
  0x39   : > { %p1061_p13 = pneg %p1060_p12  ;;  %p1066_p7 = scmp.lt.s32.totalorder %s1064_s28, %s1057_s25 }
  0x3b   : > { %p1067_p6 = por %p1066_p7, %p1065_p0 }
  0x3d   : > { %p1068_p5 = pnand %p1067_p6, %p1061_p13 }
  0x3f   : > { %1071 = shalt.err (!%p1068_p5)
}
  0x40   : > { %s1604_s27 = smov 128   ;;  %199 = sbr.rel (%p1258_p8) target bundleno = 663 (0x297), region = 32 }
  0x41   : > { %909 = dma.hbm_to_vmem [thread:$0]  (!%p1321_p11), %s186_s7, 256, %s188_s9, %s175_s10, %s1604_s27, %s1604_s27, %s1161_s5  }
  0x42   : > { %s1335_s26 = sand.u32 (!%p1258_p8), 1, %s1140_s13  }
  0x43   : > { %s852_s4 = sshll.u32 (!%p1258_p8), %s1335_s26, 4  ;;  %s202_s30 = scalar_lea.sflag (!%p1258_p8), [#allocation3], %s1335_s26 }
  0x44   : > { %s205_s6 = scalar_lea.vmem (!%p1258_p8), [#allocation2], %s852_s4 }
  0x45   : > { %1123 = dma.done.wait (%p1248_p4), %s202_s30, 256  }
  0x46   : > { %1125 = vsyncadd (%p1248_p4), %s202_s30, 4294967040 }
  0x47   : > { %1127 = dma.done.wait (%p1238_p1), [#allocation6], 512  }
  0x48   : > { %1129 = vsyncadd (%p1238_p1), [#allocation6], 4294966784  ;;  %v1347_v0 = vld [vmem:[%s205_s6] sm:$0xff]  ;;  %s1163_s24 = smov 63   ;;  %v1351_v1 = vld [vmem:[%s205_s6 + $0x8] sm:$0xff]  ;;  %vm248_vm0 = vcmask 515072  }
  0x49   : > { %242 = vrot.lane.b32.xlu0 %v1347_v0, %s1163_s24  ;;  %s1164_s22 = smov 126   ;;  %s1165_s20 = smov 127  }
  0x4a   : > { %s1166_s5 = smov 125   ;;  %s1167_s7 = smov 124  }
  0x4b   : > { %s1168_s8 = smov 123   ;;  %s1169_s9 = smov 122  }
  0x4c   : > { %s1170_s21 = smov 121   ;;  %s1171_s10 = smov 120  }
  0x4d   : > { %244 = vrot.lane.b32.xlu0 %v1351_v1, %s1163_s24  ;;  %s1172_s25 = smov 65   ;;  %s1173_s18 = smov 66  }
  0x4e   : > { %s1174_s28 = smov 67   ;;  %s1175_s27 = smov 68  }
  0x4f   : > { %s1176_s4 = smov 69   ;;  %s1177_s30 = smov 70  }
  0x50   : > { %s1178_s6 = smov 71  }
  0xbb   : > { %v243_v2 = vpop.permute.xlu0 %242 }
  0xbc   : > { %v249_v3 = vsel %vm248_vm0, %v1347_v0, %v243_v2 }
  0xbd   : > { %263 = vrot.lane.b32.xlu0 %v249_v3, %s1164_s22  ;;  %253 = vrot.lane.b32.xlu1 %v249_v3, %s1165_s20 }
  0xbf   : > { %v245_v4 = vpop.permute.xlu0 %244 }
  0xc0   : > { %v250_v5 = vsel %vm248_vm0, %v1351_v1, %v245_v4 }
  0xc1   : > { %273 = vrot.lane.b32.xlu0 %v249_v3, %s1166_s5  ;;  %255 = vrot.lane.b32.xlu1 %v250_v5, %s1165_s20  ;;  %s855_s20 = sshll.u32 %s1335_s26, 6 }
  0xc5   : > { %283 = vrot.lane.b32.xlu0 %v249_v3, %s1167_s7  ;;  %265 = vrot.lane.b32.xlu1 %v250_v5, %s1164_s22  ;;  %s1180_s22 = smov 73  }
  0xc9   : > { %293 = vrot.lane.b32.xlu0 %v249_v3, %s1168_s8  ;;  %275 = vrot.lane.b32.xlu1 %v250_v5, %s1166_s5  ;;  %s1506_s5 = scalar_lea.vmem [#allocation8], %s855_s20 }
  0xcd   : > { %303 = vrot.lane.b32.xlu0 %v249_v3, %s1169_s9  ;;  %285 = vrot.lane.b32.xlu1 %v250_v5, %s1167_s7  ;;  %s886_s7 = sshll.u32 %s1148_s15, 10  ;;  %s721_s15 = scalar_lea.sflag [#allocation4], %s1335_s26 }
  0xd1   : > { %313 = vrot.lane.b32.xlu0 %v249_v3, %s1170_s21  ;;  %295 = vrot.lane.b32.xlu1 %v250_v5, %s1168_s8  ;;  %s736_s8 = sshll.u32 %s1506_s5, 4  ;;  %s1537_s8 = int_to_ptr.vmem [resolvable:$true] %s736_s8 }
  0xd5   : > { %323 = vrot.lane.b32.xlu0 %v249_v3, %s1171_s10  ;;  %305 = vrot.lane.b32.xlu1 %v250_v5, %s1169_s9 }
  0xd9   : > { %315 = vrot.lane.b32.xlu1 %v250_v5, %s1170_s21 }
  0xdd   : > { %325 = vrot.lane.b32.xlu1 %v250_v5, %s1171_s10  ;;  %s1535_s10 = scalar_lea.hbm %s1594_s3, %s886_s7 }
 0x12f   : > { %v254_v6 = vpop.permute.xlu1 %253  ;;  %v264_v7 = vpop.permute.xlu0 %263 }
 0x130   : > { %v259_v10 = vadd.f32 %v254_v6, %v1347_v0  ;;  %v261_v16 = vmax.f32 %v1347_v0, %v254_v6 }
 0x132   : > { %v269_v13 = vadd.f32 %v264_v7, %v259_v10  ;;  %v271_v20 = vmax.f32 %v261_v16, %v264_v7 }
 0x133   : > { %v256_v8 = vpop.permute.xlu1 %255  ;;  %v274_v9 = vpop.permute.xlu0 %273 }
 0x134   : > { %v279_v17 = vadd.f32 %v274_v9, %v269_v13  ;;  %v260_v22 = vadd.f32 %v256_v8, %v1351_v1  ;;  %v281_v26 = vmax.f32 %v271_v20, %v274_v9  ;;  %v262_v34 = vmax.f32 %v1351_v1, %v256_v8 }
 0x137   : > { %v266_v11 = vpop.permute.xlu1 %265  ;;  %v284_v12 = vpop.permute.xlu0 %283 }
 0x138   : > { %v289_v21 = vadd.f32 %v284_v12, %v279_v17  ;;  %v270_v27 = vadd.f32 %v266_v11, %v260_v22  ;;  %v291_v29 = vmax.f32 %v281_v26, %v284_v12  ;;  %v272_v38 = vmax.f32 %v262_v34, %v266_v11  ;;  %v1395_v22 = vld [vmem:[#allocation5] ss:$0 sm:$0xff] }
 0x13b   : > { %v276_v14 = vpop.permute.xlu1 %275  ;;  %v294_v15 = vpop.permute.xlu0 %293 }
 0x13c   : > { %v299_v23 = vadd.f32 %v294_v15, %v289_v21  ;;  %v280_v30 = vadd.f32 %v276_v14, %v270_v27  ;;  %v301_v35 = vmax.f32 %v291_v29, %v294_v15  ;;  %v282_v43 = vmax.f32 %v272_v38, %v276_v14  ;;  %v1407_v29 = vld [vmem:[#allocation7 + $0x3] ss:$0 sm:$0xff]  ;;  %v1417_v38 = vld [vmem:[#allocation5 + $0x4] ss:$0 sm:$0xff] }
 0x13f   : > { %v286_v18 = vpop.permute.xlu1 %285  ;;  %v304_v19 = vpop.permute.xlu0 %303 }
 0x140   : > { %v309_v28 = vadd.f32 %v304_v19, %v299_v23  ;;  %v290_v36 = vadd.f32 %v286_v18, %v280_v30  ;;  %v311_v39 = vmax.f32 %v301_v35, %v304_v19  ;;  %v292_v46 = vmax.f32 %v282_v43, %v286_v18  ;;  %v1389_v18 = vld [vmem:[#allocation5 + $0x1] ss:$0 sm:$0xff]  ;;  %v1391_v19 = vld [vmem:[#allocation7 + $0x1] ss:$0 sm:$0xff]  ;;  %v1397_v23 = vld [vmem:[#allocation7] ss:$0 sm:$0xff] }
 0x143   : > { %v296_v24 = vpop.permute.xlu1 %295  ;;  %v314_v25 = vpop.permute.xlu0 %313 }
 0x144   : > { %v319_v31 = vadd.f32 %v314_v25, %v309_v28  ;;  %v300_v40 = vadd.f32 %v296_v24, %v290_v36  ;;  %v321_v44 = vmax.f32 %v311_v39, %v314_v25  ;;  %v302_v50 = vmax.f32 %v292_v46, %v296_v24  ;;  %v1399_v24 = vld [vmem:[#allocation5 + $0x2] ss:$0 sm:$0xff]  ;;  %v1401_v25 = vld [vmem:[#allocation7 + $0x2] ss:$0 sm:$0xff]  ;;  %v1405_v28 = vld [vmem:[#allocation5 + $0x3] ss:$0 sm:$0xff] }
 0x145   : > { %v1419_v39 = vld [vmem:[#allocation7 + $0x4] ss:$0 sm:$0xff] }
 0x147   : > { %v306_v32 = vpop.permute.xlu1 %305  ;;  %v324_v33 = vpop.permute.xlu0 %323 }
 0x148   : > { %v329_v37 = vadd.f32 %v324_v33, %v319_v31  ;;  %v310_v45 = vadd.f32 %v306_v32, %v300_v40  ;;  %v331_v47 = vmax.f32 %v321_v44, %v324_v33  ;;  %v312_v52 = vmax.f32 %v302_v50, %v306_v32 }
 0x14a   : > { %v333_v41 = vmul.f32 0.11111111, %v329_v37 }
 0x14b   : > { %v316_v42 = vpop.permute.xlu1 %315 }
 0x14c   : > { %337 = vrot.lane.b32.xlu0 %v333_v41, %s1163_s24  ;;  %v320_v48 = vadd.f32 %v316_v42, %v310_v45  ;;  %v322_v54 = vmax.f32 %v312_v52, %v316_v42 }
 0x14f   : > { %v326_v49 = vpop.permute.xlu1 %325 }
 0x150   : > { %v330_v51 = vadd.f32 %v326_v49, %v320_v48  ;;  %347 = vrot.lane.b32.xlu0 %v331_v47, %s1163_s24  ;;  %v332_v55 = vmax.f32 %v322_v54, %v326_v49 }
 0x152   : > { %v334_v53 = vmul.f32 0.11111111, %v330_v51 }
 0x154   : > { %339 = vrot.lane.b32.xlu1 %v334_v53, %s1163_s24 }
 0x158   : > { %349 = vrot.lane.b32.xlu1 %v332_v55, %s1163_s24  ;;  %s1179_s24 = smov 72  }
 0x1be   : > { %v338_v56 = vpop.permute.xlu0 %337 }
 0x1bf   : > { %v343_v62 = vsel %vm248_vm0, %v333_v41, %v338_v56 }
 0x1c2   : > { %v348_v57 = vpop.permute.xlu0 %347 }
 0x1c3   : > { %v353_v58 = vsel %vm248_vm0, %v331_v47, %v348_v57 }
 0x1c4   : > { %375 = vrot.lane.b32.xlu0 %v353_v58, %s1172_s25 }
 0x1c6   : > { %v340_v59 = vpop.permute.xlu1 %339 }
 0x1c7   : > { %v344_v63 = vsel %vm248_vm0, %v334_v53, %v340_v59  ;;  %v1431_v59 = vld [vmem:[#allocation7 + $0x5] ss:$0 sm:$0xff] }
 0x1c8   : > { %413 = vrot.lane.b32.xlu0 %v353_v58, %s1173_s18 }
 0x1ca   : > { %v350_v60 = vpop.permute.xlu1 %349 }
 0x1cb   : > { %v354_v61 = vsel %vm248_vm0, %v332_v55, %v350_v60 }
 0x1cc   : > { %377 = vrot.lane.b32.xlu1 %v354_v61, %s1172_s25  ;;  %451 = vrot.lane.b32.xlu0 %v353_v58, %s1174_s28 }
 0x1d0   : > { %415 = vrot.lane.b32.xlu1 %v354_v61, %s1173_s18  ;;  %489 = vrot.lane.b32.xlu0 %v353_v58, %s1175_s27 }
 0x1d4   : > { %453 = vrot.lane.b32.xlu1 %v354_v61, %s1174_s28  ;;  %527 = vrot.lane.b32.xlu0 %v353_v58, %s1176_s4 }
 0x1d8   : > { %491 = vrot.lane.b32.xlu1 %v354_v61, %s1175_s27  ;;  %565 = vrot.lane.b32.xlu0 %v353_v58, %s1177_s30 }
 0x1dc   : > { %529 = vrot.lane.b32.xlu1 %v354_v61, %s1176_s4  ;;  %603 = vrot.lane.b32.xlu0 %v353_v58, %s1178_s6 }
 0x1e0   : > { %567 = vrot.lane.b32.xlu1 %v354_v61, %s1177_s30  ;;  %641 = vrot.lane.b32.xlu0 %v353_v58, %s1179_s24 }
 0x1e4   : > { %605 = vrot.lane.b32.xlu1 %v354_v61, %s1178_s6  ;;  %363 = vrot.lane.b32.xlu0 %v343_v62, %s1172_s25 }
 0x1e8   : > { %643 = vrot.lane.b32.xlu1 %v354_v61, %s1179_s24  ;;  %403 = vrot.lane.b32.xlu0 %v343_v62, %s1173_s18 }
 0x1ec   : > { %365 = vrot.lane.b32.xlu1 %v344_v63, %s1172_s25  ;;  %441 = vrot.lane.b32.xlu0 %v343_v62, %s1174_s28  ;;  %s1072_s25 = scalar_lea.vmem %s1537_s8, 1024 }
 0x1ed   : > { %p1073_p1 = scmp.ne.s32.totalorder %s1537_s8, %s1072_s25 }
 0x1ef   : > { %p1074_p4 = pnand %p1073_p1, %p1305_p3 }
 0x1f0   : > { %405 = vrot.lane.b32.xlu1 %v344_v63, %s1173_s18  ;;  %479 = vrot.lane.b32.xlu0 %v343_v62, %s1175_s27  ;;  %s1181_s18 = smov [#allocation8]  }
 0x1f1   : > { %p1075_p6 = pneg %p1074_p4 }
 0x1f4   : > { %443 = vrot.lane.b32.xlu1 %v344_v63, %s1174_s28  ;;  %517 = vrot.lane.b32.xlu0 %v343_v62, %s1176_s4  ;;  %s1076_s28 = sshll.u32 %s1181_s18, 4  ;;  %s1077_s28 = int_to_ptr.vmem [resolvable:$false] %s1076_s28 }
 0x1f5   : > { %p1079_p8 = scmp.lt.s32.totalorder %s1537_s8, %s1077_s28 }
 0x1f8   : > { %481 = vrot.lane.b32.xlu1 %v344_v63, %s1175_s27  ;;  %555 = vrot.lane.b32.xlu0 %v343_v62, %s1177_s30  ;;  %s1078_s27 = scalar_lea.vmem %s1077_s28, 2048 }
 0x1f9   : > { %p1080_p10 = scmp.lt.s32.totalorder %s1078_s27, %s1072_s25 }
 0x1fb   : > { %p1081_p11 = por %p1080_p10, %p1079_p8 }
 0x1fc   : > { %519 = vrot.lane.b32.xlu1 %v344_v63, %s1176_s4  ;;  %593 = vrot.lane.b32.xlu0 %v343_v62, %s1178_s6 }
 0x1fd   : > { %p1082_p2 = pnand %p1081_p11, %p1075_p6 }
 0x200   : > { %557 = vrot.lane.b32.xlu1 %v344_v63, %s1177_s30  ;;  %631 = vrot.lane.b32.xlu0 %v343_v62, %s1179_s24 }
 0x204   : > { %595 = vrot.lane.b32.xlu1 %v344_v63, %s1178_s6  ;;  %669 = vrot.lane.b32.xlu0 %v343_v62, %s1180_s22 }
 0x208   : > { %633 = vrot.lane.b32.xlu1 %v344_v63, %s1179_s24  ;;  %679 = vrot.lane.b32.xlu0 %v353_v58, %s1180_s22  ;;  %v1429_v58 = vld [vmem:[#allocation5 + $0x5] ss:$0 sm:$0xff] }
 0x20c   : > { %671 = vrot.lane.b32.xlu1 %v344_v63, %s1180_s22 }
 0x210   : > { %681 = vrot.lane.b32.xlu1 %v354_v61, %s1180_s22 }
 0x236   : > { %v376_v2 = vpop.permute.xlu0 %375 }
 0x237   : > { %v381_v32 = vmul.f32 %v1395_v22, %v376_v2  ;;  %v393_v33 = vmul.f32 %v1397_v23, %v376_v2 }
 0x23a   : > { %v414_v3 = vpop.permute.xlu0 %413 }
 0x23b   : > { %v419_v26 = vmul.f32 %v1389_v18, %v414_v3  ;;  %v431_v27 = vmul.f32 %v1391_v19, %v414_v3 }
 0x23d   : > { %v421_v40 = vadd.f32 %v419_v26, %v381_v32  ;;  %v433_v41 = vadd.f32 %v431_v27, %v393_v33 }
 0x23e   : > { %v378_v4 = vpop.permute.xlu1 %377  ;;  %v452_v5 = vpop.permute.xlu0 %451 }
 0x23f   : > { %v457_v34 = vmul.f32 %v1399_v24, %v452_v5  ;;  %v469_v35 = vmul.f32 %v1401_v25, %v452_v5  ;;  %v382_v44 = vmul.f32 %v1395_v22, %v378_v4  ;;  %v394_v45 = vmul.f32 %v1397_v23, %v378_v4 }
 0x241   : > { %v459_v50 = vadd.f32 %v457_v34, %v421_v40  ;;  %v471_v51 = vadd.f32 %v469_v35, %v433_v41 }
 0x242   : > { %v416_v6 = vpop.permute.xlu1 %415  ;;  %v490_v7 = vpop.permute.xlu0 %489 }
 0x243   : > { %v420_v36 = vmul.f32 %v1389_v18, %v416_v6  ;;  %v432_v37 = vmul.f32 %v1391_v19, %v416_v6  ;;  %v495_v42 = vmul.f32 %v1405_v28, %v490_v7  ;;  %v507_v43 = vmul.f32 %v1407_v29, %v490_v7  ;;  %v1435_v6 = vld [vmem:[#allocation5 + $0x6] ss:$0 sm:$0xff]  ;;  %v1437_v7 = vld [vmem:[#allocation7 + $0x6] ss:$0 sm:$0xff] }
 0x245   : > { %v422_v54 = vadd.f32 %v420_v36, %v382_v44  ;;  %v434_v55 = vadd.f32 %v432_v37, %v394_v45  ;;  %v497_v56 = vadd.f32 %v495_v42, %v459_v50  ;;  %v509_v57 = vadd.f32 %v507_v43, %v471_v51 }
 0x246   : > { %v454_v8 = vpop.permute.xlu1 %453  ;;  %v528_v9 = vpop.permute.xlu0 %527 }
 0x247   : > { %v458_v46 = vmul.f32 %v1399_v24, %v454_v8  ;;  %v470_v47 = vmul.f32 %v1401_v25, %v454_v8  ;;  %v533_v52 = vmul.f32 %v1417_v38, %v528_v9  ;;  %v545_v53 = vmul.f32 %v1419_v39, %v528_v9 }
 0x249   : > { %v460_v60 = vadd.f32 %v458_v46, %v422_v54  ;;  %v472_v61 = vadd.f32 %v470_v47, %v434_v55  ;;  %v535_v4 = vadd.f32 %v533_v52, %v497_v56  ;;  %v547_v5 = vadd.f32 %v545_v53, %v509_v57 }
 0x24a   : > { %v492_v10 = vpop.permute.xlu1 %491  ;;  %v566_v11 = vpop.permute.xlu0 %565 }
 0x24b   : > { %v496_v62 = vmul.f32 %v1405_v28, %v492_v10  ;;  %v508_v63 = vmul.f32 %v1407_v29, %v492_v10  ;;  %v571_v26 = vmul.f32 %v1429_v58, %v566_v11  ;;  %v583_v27 = vmul.f32 %v1431_v59, %v566_v11 }
 0x24d   : > { %v498_v37 = vadd.f32 %v496_v62, %v460_v60  ;;  %v573_v45 = vadd.f32 %v571_v26, %v535_v4  ;;  %v585_v46 = vadd.f32 %v583_v27, %v547_v5  ;;  %v870_v26 = vld [vmem:[#allocation5 + $0x7] ss:$0 sm:$0xff]  ;;  %v871_v27 = vld [vmem:[#allocation7 + $0x7] ss:$0 sm:$0xff] }
 0x24e   : > { %v1379_v12 = vpop.permute.xlu1 %529  ;;  %v1381_v13 = vpop.permute.xlu0 %603 }
 0x24f   : > { %v534_v32 = vmul.f32 %v1417_v38, %v1379_v12  ;;  %v546_v10 = vmul.f32 %v1419_v39, %v1379_v12  ;;  %v609_v40 = vmul.f32 %v1435_v6, %v1381_v13  ;;  %v621_v11 = vmul.f32 %v1437_v7, %v1381_v13 }
 0x251   : > { %v1457_v47 = vadd.f32 %v534_v32, %v498_v37  ;;  %v611_v53 = vadd.f32 %v609_v40, %v573_v45  ;;  %v623_v54 = vadd.f32 %v621_v11, %v585_v46  ;;  %v1479_v40 = vld [vmem:[#allocation5 + $0x8] ss:$0 sm:$0xff]  ;;  %v1481_v11 = vld [vmem:[#allocation7 + $0x8] ss:$0 sm:$0xff] }
 0x252   : > { %v1383_v14 = vpop.permute.xlu1 %567  ;;  %v1385_v15 = vpop.permute.xlu0 %641 }
 0x256   : > { %v1387_v16 = vpop.permute.xlu1 %605  ;;  %v364_v17 = vpop.permute.xlu0 %363 }
 0x257   : > { %v369_v33 = vmul.f32 %v1395_v22, %v364_v17  ;;  %v389_v34 = vmul.f32 %v1397_v23, %v364_v17 }
 0x25a   : > { %v1393_v20 = vpop.permute.xlu1 %643  ;;  %v404_v21 = vpop.permute.xlu0 %403 }
 0x25b   : > { %v409_v8 = vmul.f32 %v1389_v18, %v404_v21  ;;  %v427_v9 = vmul.f32 %v1391_v19, %v404_v21  ;;  %v510_v21 = vadd.f32 %v508_v63, %v472_v61 }
 0x25d   : > { %v411_v43 = vadd.f32 %v409_v8, %v369_v33  ;;  %v429_v12 = vadd.f32 %v427_v9, %v389_v34 }
 0x25e   : > { %v1409_v30 = vpop.permute.xlu1 %365  ;;  %v442_v31 = vpop.permute.xlu0 %441 }
 0x25f   : > { %v447_v35 = vmul.f32 %v1399_v24, %v442_v31  ;;  %v465_v36 = vmul.f32 %v1401_v25, %v442_v31  ;;  %v1459_v31 = vadd.f32 %v546_v10, %v510_v21  ;;  %v370_v4 = vmul.f32 %v1395_v22, %v1409_v30 }
 0x261   : > { %v449_v50 = vadd.f32 %v447_v35, %v411_v43  ;;  %v467_v51 = vadd.f32 %v465_v36, %v429_v12 }
 0x262   : > { %v406_v48 = vpop.permute.xlu1 %405  ;;  %v480_v49 = vpop.permute.xlu0 %479 }
 0x263   : > { %v485_v44 = vmul.f32 %v1405_v28, %v480_v49  ;;  %v503_v17 = vmul.f32 %v1407_v29, %v480_v49  ;;  %v410_v55 = vmul.f32 %v1389_v18, %v406_v48  ;;  %v428_v56 = vmul.f32 %v1391_v19, %v406_v48 }
 0x265   : > { %v487_v60 = vadd.f32 %v485_v44, %v449_v50  ;;  %v505_v61 = vadd.f32 %v503_v17, %v467_v51  ;;  %v412_v32 = vadd.f32 %v410_v55, %v370_v4 }
 0x266   : > { %v444_v2 = vpop.permute.xlu1 %443  ;;  %v518_v3 = vpop.permute.xlu0 %517 }
 0x267   : > { %v523_v52 = vmul.f32 %v1417_v38, %v518_v3  ;;  %v541_v13 = vmul.f32 %v1419_v39, %v518_v3  ;;  %v390_v3 = vmul.f32 %v1397_v23, %v1409_v30  ;;  %v448_v5 = vmul.f32 %v1399_v24, %v444_v2 }
 0x268   : > { %v466_v18 = vmul.f32 %v1401_v25, %v444_v2 }
 0x269   : > { %v525_v8 = vadd.f32 %v523_v52, %v487_v60  ;;  %v543_v19 = vadd.f32 %v541_v13, %v505_v61  ;;  %v430_v10 = vadd.f32 %v428_v56, %v390_v3  ;;  %v450_v2 = vadd.f32 %v448_v5, %v412_v32 }
 0x26a   : > { %v482_v41 = vpop.permute.xlu1 %481  ;;  %v556_v42 = vpop.permute.xlu0 %555  ;;  %v584_v52 = vmul.f32 %v1431_v59, %v1383_v14 }
 0x26b   : > { %v561_v62 = vmul.f32 %v1429_v58, %v556_v42  ;;  %v579_v63 = vmul.f32 %v1431_v59, %v556_v42  ;;  %v486_v33 = vmul.f32 %v1405_v28, %v482_v41  ;;  %v504_v22 = vmul.f32 %v1407_v29, %v482_v41 }
 0x26c   : > { %v468_v36 = vadd.f32 %v466_v18, %v430_v10  ;;  %v647_v28 = vmul.f32 %v870_v26, %v1385_v15  ;;  %v659_v29 = vmul.f32 %v871_v27, %v1385_v15  ;;  %v572_v15 = vmul.f32 %v1429_v58, %v1383_v14 }
 0x26d   : > { %v563_v30 = vadd.f32 %v561_v62, %v525_v8  ;;  %v581_v24 = vadd.f32 %v579_v63, %v543_v19  ;;  %v488_v43 = vadd.f32 %v486_v33, %v450_v2  ;;  %v622_v19 = vmul.f32 %v1437_v7, %v1387_v16 }
 0x26e   : > { %v520_v57 = vpop.permute.xlu1 %519  ;;  %v594_v49 = vpop.permute.xlu0 %593  ;;  %v506_v12 = vadd.f32 %v504_v22, %v468_v36  ;;  %v649_v61 = vadd.f32 %v647_v28, %v611_v53  ;;  %v661_v62 = vadd.f32 %v659_v29, %v623_v54  ;;  %v574_v54 = vadd.f32 %v572_v15, %v1457_v47 }
 0x26f   : > { %v599_v48 = vmul.f32 %v1435_v6, %v594_v49  ;;  %v617_v9 = vmul.f32 %v1437_v7, %v594_v49  ;;  %v524_v37 = vmul.f32 %v1417_v38, %v520_v57  ;;  %v542_v21 = vmul.f32 %v1419_v39, %v520_v57 }
 0x271   : > { %v601_v41 = vadd.f32 %v599_v48, %v563_v30  ;;  %v619_v42 = vadd.f32 %v617_v9, %v581_v24  ;;  %v526_v13 = vadd.f32 %v524_v37, %v488_v43  ;;  %v544_v55 = vadd.f32 %v542_v21, %v506_v12 }
 0x272   : > { %v558_v34 = vpop.permute.xlu1 %557  ;;  %v632_v23 = vpop.permute.xlu0 %631  ;;  %v586_v9 = vadd.f32 %v584_v52, %v1459_v31 }
 0x273   : > { %v637_v35 = vmul.f32 %v870_v26, %v632_v23  ;;  %v655_v25 = vmul.f32 %v871_v27, %v632_v23  ;;  %v562_v44 = vmul.f32 %v1429_v58, %v558_v34  ;;  %v580_v17 = vmul.f32 %v1431_v59, %v558_v34 }
 0x274   : > { %v610_v59 = vmul.f32 %v1435_v6, %v1387_v16  ;;  %v648_v16 = vmul.f32 %v870_v26, %v1393_v20  ;;  %v624_v24 = vadd.f32 %v622_v19, %v586_v9 }
 0x275   : > { %v639_v46 = vadd.f32 %v637_v35, %v601_v41  ;;  %v657_v39 = vadd.f32 %v655_v25, %v619_v42  ;;  %v564_v63 = vadd.f32 %v562_v44, %v526_v13  ;;  %v582_v4 = vadd.f32 %v580_v17, %v544_v55 }
 0x276   : > { %v596_v38 = vpop.permute.xlu1 %595  ;;  %v670_v45 = vpop.permute.xlu0 %669  ;;  %v612_v30 = vadd.f32 %v610_v59, %v574_v54 }
 0x277   : > { %v675_v50 = vmul.f32 %v1479_v40, %v670_v45  ;;  %v693_v51 = vmul.f32 %v1481_v11, %v670_v45  ;;  %v600_v56 = vmul.f32 %v1435_v6, %v596_v38  ;;  %v618_v57 = vmul.f32 %v1437_v7, %v596_v38 }
 0x278   : > { %v660_v6 = vmul.f32 %v871_v27, %v1393_v20  ;;  %v650_v25 = vadd.f32 %v648_v16, %v612_v30 }
 0x279   : > { %v677_v49 = vadd.f32 %v675_v50, %v639_v46  ;;  %v695_v60 = vadd.f32 %v693_v51, %v657_v39  ;;  %v602_v32 = vadd.f32 %v600_v56, %v564_v63  ;;  %v620_v10 = vadd.f32 %v618_v57, %v582_v4 }
 0x27a   : > { %v634_v3 = vpop.permute.xlu1 %633  ;;  %v680_v5 = vpop.permute.xlu0 %679  ;;  %v662_v2 = vadd.f32 %v660_v6, %v624_v24 }
 0x27b   : > { %v701_v18 = vadd.f32 %v677_v49, %v1347_v0  ;;  %v705_v58 = vadd.f32 %v695_v60, %v1347_v0  ;;  %v638_v8 = vmul.f32 %v870_v26, %v634_v3  ;;  %v656_v14 = vmul.f32 %v871_v27, %v634_v3 }
 0x27c   : > { %v685_v48 = vmul.f32 %v1479_v40, %v680_v5  ;;  %v697_v53 = vmul.f32 %v1481_v11, %v680_v5 }
 0x27d   : > { %703 = vst.msk [vmem:[%s1506_s5] sm:$0xff] %vm248_vm0, %v701_v18  ;;  %874 = vst.msk [vmem:[%s1506_s5 + $0x10] sm:$0xff] %vm248_vm0, %v705_v58  ;;  %v640_v31 = vadd.f32 %v638_v8, %v602_v32  ;;  %v658_v22 = vadd.f32 %v656_v14, %v620_v10 }
 0x27e   : > { %v687_v7 = vadd.f32 %v685_v48, %v649_v61  ;;  %v699_v47 = vadd.f32 %v697_v53, %v661_v62  ;;  %v672_v33 = vpop.permute.xlu1 %671 }
 0x27f   : > { %v676_v34 = vmul.f32 %v1479_v40, %v672_v33  ;;  %v694_v23 = vmul.f32 %v1481_v11, %v672_v33 }
 0x280   : > { %v710_v26 = vadd.f32 %v687_v7, %v1347_v0  ;;  %v715_v20 = vadd.f32 %v699_v47, %v1347_v0 }
 0x281   : > { %v678_v27 = vadd.f32 %v676_v34, %v640_v31  ;;  %v696_v35 = vadd.f32 %v694_v23, %v658_v22 }
 0x282   : > { %876 = vst.msk [vmem:[%s1506_s5 + $0x20] sm:$0xff] %vm248_vm0, %v710_v26  ;;  %878 = vst.msk [vmem:[%s1506_s5 + $0x30] sm:$0xff] %vm248_vm0, %v715_v20  ;;  %v682_v36 = vpop.permute.xlu1 %681 }
 0x283   : > { %v702_v37 = vadd.f32 %v678_v27, %v1351_v1  ;;  %v706_v21 = vadd.f32 %v696_v35, %v1351_v1  ;;  %v686_v28 = vmul.f32 %v1479_v40, %v682_v36  ;;  %v698_v0 = vmul.f32 %v1481_v11, %v682_v36 }
 0x285   : > { %704 = vst.msk [vmem:[%s1506_s5 + $0x8] sm:$0xff] %vm248_vm0, %v702_v37  ;;  %875 = vst.msk [vmem:[%s1506_s5 + $0x18] sm:$0xff] %vm248_vm0, %v706_v21  ;;  %v688_v29 = vadd.f32 %v686_v28, %v650_v25  ;;  %v700_v41 = vadd.f32 %v698_v0, %v662_v2 }
 0x287   : > { %v711_v40 = vadd.f32 %v688_v29, %v1351_v1  ;;  %v716_v11 = vadd.f32 %v700_v41, %v1351_v1 }
 0x289   : > { %877 = vst.msk [vmem:[%s1506_s5 + $0x28] sm:$0xff] %vm248_vm0, %v711_v40  ;;  %879 = vst.msk [vmem:[%s1506_s5 + $0x38] sm:$0xff] %vm248_vm0, %v716_v11 }
 0x28a   : > { %1085 = shalt.err (!%p1082_p2)
}
 0x28b   : > { %s1086_s4 = scalar_lea.hbm %s1535_s10, 1024  ;;  %s1090_s24 = scalar_lea.hbm %s1594_s3, 2048 }
 0x28c   : > { %p1087_p9 = scmp.ne.s32.totalorder %s1535_s10, %s1086_s4  ;;  %p1091_p0 = scmp.lt.s32.totalorder %s1535_s10, %s1594_s3 }
 0x28d   : > { %p1092_p7 = scmp.lt.s32.totalorder %s1090_s24, %s1086_s4 }
 0x28e   : > { %p1088_p12 = pnand %p1087_p9, %p1305_p3 }
 0x28f   : > { %p1093_p5 = por %p1092_p7, %p1091_p0 }
 0x290   : > { %p1089_p13 = pneg %p1088_p12 }
 0x292   : > { %p1094_p1 = pnand %p1093_p5, %p1089_p13 }
 0x294   : > { %1097 = shalt.err (!%p1094_p1)
}
 0x295   : > { %s1182_s5 = smov 128   ;;  %s1183_s7 = smov 8  }
 0x296   : > { %897 = dma.vmem_to_hbm [thread:$0]  (%p1305_p3), %s1537_s8, 1024, %s1535_s10, %s721_s15, %s1182_s5, %s1182_s5, %s1183_s7  }
 0x297 PF: > { %s751_s9 = sand.u32 1, %s1136_s12   ;;  %p1605_p4 = scmp.ne.s32.totalorder %s1599_s23, 0 }
 0x298   : > { %p1606_p6 = scmp.ge.s32.totalorder %s1156_s17, 2  ;;  %s752_s21 = scalar_lea.sflag [#allocation4], %s751_s9 }
 0x29a   : > { %p911_p8 = pnand %p1606_p6, %p1605_p4 }
 0x29c   : > { %p912_p10 = pneg %p911_p8 }
 0x29e   : > { %1131 = dma.done.wait (%p912_p10), %s752_s21, 1024  }
 0x29f   : > { %1133 = vsyncadd (%p912_p10), %s752_s21, 4294966272  ;;  %s20_s17 = sadd.s32 1, %s1156_s17   ;;  %s1607_s12 = smov %s1140_s13 }
 0x2a0   : > { %p17_p11 = scmp.ge.s32.totalorder %s20_s17, 4   ;;  %s1608_s13 = smov %s1144_s14 }
 0x2a1   : > { %s1609_s14 = smov %s1314_s29  ;;  %s1610_s15 = smov %s1152_s16 }
 0x2a2   : > { %s1611_s16 = smov %s1613_s11  ;;  %19 = sbr.rel (!%p17_p11) target bundleno = 7 (0x7), region = 88 }
 0x2a7   :  { %757 = vsyncpa [#allocation3], 1 }
 0x2a8   :  { %759 = vsyncpa [#allocation3 + $0x1], 1 }
 0x2a9   :  { %760 = vsyncpa [#allocation6], 1 }
 0x2aa   :  { %761 = vsyncpa [#allocation4], 1 }
 0x2ab   :  { %763 = vsyncpa [#allocation4 + $0x1], 1 }

</bundles_post_ra>
